<compile_context>
chip_gen: v6e
topology: v6e:2x2x1
jax: 0.10.0
libtpu: 0.0.40
codegen_flags: <defaults>
</compile_context>

<pallas_src>
import functools

import jax
import jax.numpy as jnp
from jax.experimental import pallas as pl
from jax.experimental.pallas import tpu as pltpu

_LANES = 128
_SUBLANES = 8


def _soft_dice_kernel(logits_ref, targets_ref,
                      inter_ref, probs_ref, targ_ref,
                      *, d_total, need_mask):
    """Grid = (sample, k-block of the flattened feature dim).

    logits_ref, targets_ref : (1, S, 128) VMEM tiles (S multiple of 8)
    inter_ref/probs_ref/targ_ref : (1, 8, 128) f32 output blocks, resident
        across the k axis (accumulators), one per sample.
    """
    k = pl.program_id(1)

    @pl.when(k == 0)
    def _():
        inter_ref[...] = jnp.zeros_like(inter_ref)
        probs_ref[...] = jnp.zeros_like(probs_ref)
        targ_ref[...] = jnp.zeros_like(targ_ref)

    x = logits_ref[0].astype(jnp.float32)     # (S, 128)
    t = targets_ref[0].astype(jnp.float32)    # (S, 128)
    probs = jax.nn.sigmoid(x)                 # EUP transcendental path

    s_rows, lanes = x.shape
    if need_mask:
        # Mask lanes/rows beyond the true flattened feature size d_total
        # (covers both lane-tail padding and partial last k-blocks).
        row = jax.lax.broadcasted_iota(jnp.int32, (s_rows, lanes), 0)
        lane = jax.lax.broadcasted_iota(jnp.int32, (s_rows, lanes), 1)
        gidx = (k * s_rows + row) * lanes + lane
        valid = gidx < d_total
        probs = jnp.where(valid, probs, jnp.float32(0.0))
        t = jnp.where(valid, t, jnp.float32(0.0))

    # Full-vreg partial sums: (S,128) -> (S//8, 8, 128) -> sum over leading
    # axis (pure VPU vreg adds); cross-lane reduction is deferred to JAX.
    inter_ref[0] += (probs * t).reshape(-1, _SUBLANES, lanes).sum(axis=0)
    probs_ref[0] += probs.reshape(-1, _SUBLANES, lanes).sum(axis=0)
    targ_ref[0] += t.reshape(-1, _SUBLANES, lanes).sum(axis=0)


@functools.partial(jax.jit, static_argnames=("block_bytes",))
def soft_dice_loss(logits, targets, *, block_bytes=4 * 1024 * 1024):
    """logits, targets: (N, ...) float arrays.  Returns scalar f32 loss."""
    n = logits.shape[0]
    d = 1
    for s in logits.shape[1:]:
        d *= int(s)

    # Per-sample rows of 128 lanes, rounded up to a multiple of 8 sublanes.
    r = -(-d // _LANES)
    r_pad = -(-r // _SUBLANES) * _SUBLANES
    d_layout = r_pad * _LANES

    logits2d = logits.reshape(n, d)
    targets2d = targets.reshape(n, d)
    if d_layout != d:
        # TODO(synk): lane-unaligned D needs one small zero-pad pass so the
        # (N, R, 128) relayout is a pure reshape; padded lanes are masked
        # out inside the kernel (dtype-agnostic, no -1e30 sentinel).
        logits2d = jnp.pad(logits2d, ((0, 0), (0, d_layout - d)))
        targets2d = jnp.pad(targets2d, ((0, 0), (0, d_layout - d)))

    logits3d = logits2d.reshape(n, r_pad, _LANES)
    targets3d = targets2d.reshape(n, r_pad, _LANES)

    # Rows per block: largest multiple of 8 whose f32 block fits block_bytes.
    s_target = max(_SUBLANES,
                   (block_bytes // (_LANES * 4)) // _SUBLANES * _SUBLANES)
    s_rows = min(s_target, r_pad)
    num_k = -(-r_pad // s_rows)
    need_mask = (num_k * s_rows * _LANES) != d

    kernel = functools.partial(_soft_dice_kernel,
                               d_total=d, need_mask=need_mask)

    part_shape = jax.ShapeDtypeStruct((n, _SUBLANES, _LANES), jnp.float32)
    out_block = pl.BlockSpec((1, _SUBLANES, _LANES), lambda i, k: (i, 0, 0))
    in_block = pl.BlockSpec((1, s_rows, _LANES), lambda i, k: (i, k, 0))

    # 2 inputs x 2 pipeline buffers per block + 3 small output blocks; keep
    # the scoped-VMEM request modest so it is valid on v5e/v6e/v7x alike.
    vmem_limit = 32 * 1024 * 1024

    inter_p, probs_p, targ_p = pl.pallas_call(
        kernel,
        out_shape=(part_shape, part_shape, part_shape),
        grid_spec=pltpu.PrefetchScalarGridSpec(
            num_scalar_prefetch=0,
            grid=(n, num_k),
            in_specs=[in_block, in_block],
            out_specs=[out_block, out_block, out_block],
        ),
        compiler_params=pltpu.CompilerParams(
            dimension_semantics=("parallel", "arbitrary"),
            vmem_limit_bytes=vmem_limit,
        ),
    )(logits3d, targets3d)

    # Tiny final dice combine in plain JAX (N*3*8*128 floats).
    inter = jnp.sum(inter_p, axis=(1, 2))   # (N,)
    psum = jnp.sum(probs_p, axis=(1, 2))    # (N,)
    tsum = jnp.sum(targ_p, axis=(1, 2))     # (N,)

    smooth = jnp.float32(1.0)
    score = (2.0 * inter + smooth) / (psum + tsum + smooth)
    return jnp.float32(1.0) - jnp.sum(score) / jnp.float32(n)


def _reference(logits, targets):
    n = logits.shape[0]
    probs = jax.nn.sigmoid(logits).reshape(n, -1)
    targ = targets.reshape(n, -1)
    inter = jnp.sum(probs * targ, axis=1)
    score = (2.0 * inter + 1.0) / (jnp.sum(probs, 1) + jnp.sum(targ, 1) + 1.0)
    return 1.0 - jnp.sum(score) / n


if __name__ == "__main__":
    key = jax.random.PRNGKey(0)
    k1, k2 = jax.random.split(key)

    N, C, H, W = 2, 4, 16, 16
    logits = jax.random.normal(k1, (N, C, H, W), dtype=jnp.float32)
    targets = (jax.random.uniform(k2, (N, C, H, W)) > 0.5).astype(jnp.float32)

    loss = soft_dice_loss(logits, targets)
    loss = jax.block_until_ready(loss)

    ref = _reference(logits, targets)
    assert jnp.allclose(loss, ref, atol=1e-5, rtol=1e-5), (loss, ref)

    print("KERNEL_OK")
</pallas_src>

<mosaic_0001>
module attributes {stable_mosaic.version = 11 : i64} {
  func.func @_soft_dice_kernel(%arg0: i32, %arg1: i32, %arg2: memref<1x8x128xf32, #tpu.memory_space<vmem>>, %arg3: memref<1x8x128xf32, #tpu.memory_space<vmem>>, %arg4: memref<1x8x128xf32, #tpu.memory_space<vmem>>, %arg5: memref<1x8x128xf32, #tpu.memory_space<vmem>>, %arg6: memref<1x8x128xf32, #tpu.memory_space<vmem>>) attributes {dimension_semantics = [#tpu.dimension_semantics<parallel>, #tpu.dimension_semantics<arbitrary>], iteration_bounds = array<i64: 2, 1>, scalar_prefetch = 0 : i64, scratch_operands = 0 : i64, tpu.core_type = #tpu.core_type<tc>, window_params = [{transform_indices = @transform_0, window_bounds = array<i64: 1, 8, 128>}, {transform_indices = @transform_1, window_bounds = array<i64: 1, 8, 128>}, {transform_indices = @transform_2, window_bounds = array<i64: 1, 8, 128>}, {transform_indices = @transform_3, window_bounds = array<i64: 1, 8, 128>}, {transform_indices = @transform_4, window_bounds = array<i64: 1, 8, 128>}]} {
    %c0_i32 = arith.constant 0 : i32
    %0 = arith.cmpi eq, %arg1, %c0_i32 : i32
    %1 = arith.extui %0 : i1 to i32
    %c0_i32_0 = arith.constant 0 : i32
    %2 = arith.cmpi ne, %1, %c0_i32_0 : i32
    scf.if %2 {
      %cst_27 = arith.constant 0.000000e+00 : f32
      %37 = vector.broadcast %cst_27 : f32 to vector<1x8x128xf32>
      %c0_28 = arith.constant 0 : index
      %c0_29 = arith.constant 0 : index
      %c0_30 = arith.constant 0 : index
      %38 = vector.load %arg4[%c0_28, %c0_29, %c0_30] : memref<1x8x128xf32, #tpu.memory_space<vmem>>, vector<1x8x128xf32>
      tpu.vector_store %arg4[%c0_28, %c0_29, %c0_30], %37 {strides = array<i32>} : memref<1x8x128xf32, #tpu.memory_space<vmem>>, vector<1x8x128xf32>,
      %cst_31 = arith.constant 0.000000e+00 : f32
      %39 = vector.broadcast %cst_31 : f32 to vector<1x8x128xf32>
      %c0_32 = arith.constant 0 : index
      %c0_33 = arith.constant 0 : index
      %c0_34 = arith.constant 0 : index
      %40 = vector.load %arg5[%c0_32, %c0_33, %c0_34] : memref<1x8x128xf32, #tpu.memory_space<vmem>>, vector<1x8x128xf32>
      tpu.vector_store %arg5[%c0_32, %c0_33, %c0_34], %39 {strides = array<i32>} : memref<1x8x128xf32, #tpu.memory_space<vmem>>, vector<1x8x128xf32>,
      %cst_35 = arith.constant 0.000000e+00 : f32
      %41 = vector.broadcast %cst_35 : f32 to vector<1x8x128xf32>
      %c0_36 = arith.constant 0 : index
      %c0_37 = arith.constant 0 : index
      %c0_38 = arith.constant 0 : index
      %42 = vector.load %arg6[%c0_36, %c0_37, %c0_38] : memref<1x8x128xf32, #tpu.memory_space<vmem>>, vector<1x8x128xf32>
      tpu.vector_store %arg6[%c0_36, %c0_37, %c0_38], %41 {strides = array<i32>} : memref<1x8x128xf32, #tpu.memory_space<vmem>>, vector<1x8x128xf32>,
    } else {
    }
    %c0 = arith.constant 0 : index
    %c0_1 = arith.constant 0 : index
    %c0_2 = arith.constant 0 : index
    %3 = vector.load %arg2[%c0, %c0_1, %c0_2] : memref<1x8x128xf32, #tpu.memory_space<vmem>>, vector<1x8x128xf32>
    %4 = vector.shape_cast %3 : vector<1x8x128xf32> to vector<8x128xf32>
    %c0_3 = arith.constant 0 : index
    %c0_4 = arith.constant 0 : index
    %c0_5 = arith.constant 0 : index
    %5 = vector.load %arg3[%c0_3, %c0_4, %c0_5] : memref<1x8x128xf32, #tpu.memory_space<vmem>>, vector<1x8x128xf32>
    %6 = vector.shape_cast %5 : vector<1x8x128xf32> to vector<8x128xf32>
    %7 = arith.negf %4 : vector<8x128xf32>
    %8 = math.exp %7 : vector<8x128xf32>
    %cst = arith.constant 1.000000e+00 : f32
    %9 = vector.broadcast %cst : f32 to vector<8x128xf32>
    %10 = arith.addf %9, %8 : vector<8x128xf32>
    %11 = arith.divf %9, %10 : vector<8x128xf32>
    %c0_6 = arith.constant 0 : index
    %c0_7 = arith.constant 0 : index
    %c0_8 = arith.constant 0 : index
    %12 = vector.load %arg4[%c0_6, %c0_7, %c0_8] : memref<1x8x128xf32, #tpu.memory_space<vmem>>, vector<1x8x128xf32>
    %13 = vector.shape_cast %12 : vector<1x8x128xf32> to vector<8x128xf32>
    %14 = arith.mulf %11, %6 : vector<8x128xf32>
    %15 = vector.shape_cast %14 : vector<8x128xf32> to vector<1x8x128xf32>
    %cst_9 = arith.constant dense<0.000000e+00> : vector<8x128xf32>
    %16 = vector.multi_reduction <add>, %15, %cst_9 [0] : vector<1x8x128xf32> to vector<8x128xf32>
    %17 = arith.addf %13, %16 : vector<8x128xf32>
    %c0_10 = arith.constant 0 : index
    %c0_11 = arith.constant 0 : index
    %c0_12 = arith.constant 0 : index
    %18 = vector.load %arg4[%c0_10, %c0_11, %c0_12] : memref<1x8x128xf32, #tpu.memory_space<vmem>>, vector<1x8x128xf32>
    %19 = vector.shape_cast %18 : vector<1x8x128xf32> to vector<8x128xf32>
    %20 = vector.shape_cast %17 : vector<8x128xf32> to vector<1x8x128xf32>
    tpu.vector_store %arg4[%c0_10, %c0_11, %c0_12], %20 {strides = array<i32>} : memref<1x8x128xf32, #tpu.memory_space<vmem>>, vector<1x8x128xf32>,
    %c0_13 = arith.constant 0 : index
    %c0_14 = arith.constant 0 : index
    %c0_15 = arith.constant 0 : index
    %21 = vector.load %arg5[%c0_13, %c0_14, %c0_15] : memref<1x8x128xf32, #tpu.memory_space<vmem>>, vector<1x8x128xf32>
    %22 = vector.shape_cast %21 : vector<1x8x128xf32> to vector<8x128xf32>
    %23 = vector.shape_cast %11 : vector<8x128xf32> to vector<1x8x128xf32>
    %cst_16 = arith.constant dense<0.000000e+00> : vector<8x128xf32>
    %24 = vector.multi_reduction <add>, %23, %cst_16 [0] : vector<1x8x128xf32> to vector<8x128xf32>
    %25 = arith.addf %22, %24 : vector<8x128xf32>
    %c0_17 = arith.constant 0 : index
    %c0_18 = arith.constant 0 : index
    %c0_19 = arith.constant 0 : index
    %26 = vector.load %arg5[%c0_17, %c0_18, %c0_19] : memref<1x8x128xf32, #tpu.memory_space<vmem>>, vector<1x8x128xf32>
    %27 = vector.shape_cast %26 : vector<1x8x128xf32> to vector<8x128xf32>
    %28 = vector.shape_cast %25 : vector<8x128xf32> to vector<1x8x128xf32>
    tpu.vector_store %arg5[%c0_17, %c0_18, %c0_19], %28 {strides = array<i32>} : memref<1x8x128xf32, #tpu.memory_space<vmem>>, vector<1x8x128xf32>,
    %c0_20 = arith.constant 0 : index
    %c0_21 = arith.constant 0 : index
    %c0_22 = arith.constant 0 : index
    %29 = vector.load %arg6[%c0_20, %c0_21, %c0_22] : memref<1x8x128xf32, #tpu.memory_space<vmem>>, vector<1x8x128xf32>
    %30 = vector.shape_cast %29 : vector<1x8x128xf32> to vector<8x128xf32>
    %31 = vector.shape_cast %6 : vector<8x128xf32> to vector<1x8x128xf32>
    %cst_23 = arith.constant dense<0.000000e+00> : vector<8x128xf32>
    %32 = vector.multi_reduction <add>, %31, %cst_23 [0] : vector<1x8x128xf32> to vector<8x128xf32>
    %33 = arith.addf %30, %32 : vector<8x128xf32>
    %c0_24 = arith.constant 0 : index
    %c0_25 = arith.constant 0 : index
    %c0_26 = arith.constant 0 : index
    %34 = vector.load %arg6[%c0_24, %c0_25, %c0_26] : memref<1x8x128xf32, #tpu.memory_space<vmem>>, vector<1x8x128xf32>
    %35 = vector.shape_cast %34 : vector<1x8x128xf32> to vector<8x128xf32>
    %36 = vector.shape_cast %33 : vector<8x128xf32> to vector<1x8x128xf32>
    tpu.vector_store %arg6[%c0_24, %c0_25, %c0_26], %36 {strides = array<i32>} : memref<1x8x128xf32, #tpu.memory_space<vmem>>, vector<1x8x128xf32>,
    return
  }
  func.func @transform_0(%arg0: i32, %arg1: i32) -> (i32, i32, i32) {
    %c0_i32 = arith.constant 0 : i32
    %c0_i32_0 = arith.constant 0 : i32
    return %arg0, %arg1, %c0_i32 : i32, i32, i32
  }
  func.func @transform_1(%arg0: i32, %arg1: i32) -> (i32, i32, i32) {
    %c0_i32 = arith.constant 0 : i32
    %c0_i32_0 = arith.constant 0 : i32
    return %arg0, %arg1, %c0_i32 : i32, i32, i32
  }
  func.func @transform_2(%arg0: i32, %arg1: i32) -> (i32, i32, i32) {
    %c0_i32 = arith.constant 0 : i32
    %c0_i32_0 = arith.constant 0 : i32
    %c0_i32_1 = arith.constant 0 : i32
    return %arg0, %c0_i32, %c0_i32_0 : i32, i32, i32
  }
  func.func @transform_3(%arg0: i32, %arg1: i32) -> (i32, i32, i32) {
    %c0_i32 = arith.constant 0 : i32
    %c0_i32_0 = arith.constant 0 : i32
    %c0_i32_1 = arith.constant 0 : i32
    return %arg0, %c0_i32, %c0_i32_0 : i32, i32, i32
  }
  func.func @transform_4(%arg0: i32, %arg1: i32) -> (i32, i32, i32) {
    %c0_i32 = arith.constant 0 : i32
    %c0_i32_0 = arith.constant 0 : i32
    %c0_i32_1 = arith.constant 0 : i32
    return %arg0, %c0_i32, %c0_i32_0 : i32, i32, i32
  }
}

</mosaic_0001>

<bundles_post_ra>
// kernel: soft_dice_loss.1
= control target key start
LH: loop header
LB: loop body
LE: loop exit
PB: predicated region body
PF: predicated region fallthrough
CT: control target
= control target key end

     0   :  { %s525_s15 = smov 0   ;;  %s527_s16 = smov 0   ;;  %s564_s0 = inlined_call_operand.vmem [shape: f32[2,8,128], index: 0, kind: input, shape index: {}]   ;;  %s565_s1 = inlined_call_operand.vmem [shape: f32[2,8,128], index: 1, kind: input, shape index: {}]   ;;  %s566_s2 = inlined_call_operand.vmem [shape: f32[2,8,128], index: 2, kind: output, shape index: {0}]   ;;  %s567_s3 = inlined_call_operand.vmem [shape: f32[2,8,128], index: 3, kind: output, shape index: {1}]   ;;  %s568_s4 = inlined_call_operand.vmem [shape: f32[2,8,128], index: 4, kind: output, shape index: {2}]  }
   0x1   :  { %s529_s17 = smov 0  }
   0x2 LB: > { %s27_s18 = sadd.s32 1, %s494_s16  ;;  %p438_p0 = scmp.ge.s32.totalorder %s498_s17, 1  ;;  %s498_s17 = sphi %s529_s17, %s15_s17   ;;  %s494_s16 = sphi %s527_s16, %s570_s16   ;;  %s490_s15 = sphi %s525_s15, %s569_s15  }
   0x3   : > { %p29_p1 = scmp.ge.s32.totalorder %s27_s18, 2  ;;  %p197_p2 = scmp.lt.s32.totalorder %s498_s17, 3 }
   0x5   : > { %s572_s18 = smov (%p29_p1, %s27_s18), 0  ;;  %p198_p3 = pnand %p438_p0, %p197_p2 }
   0x6   : > { %p239_p4 = scmp.lt.s32.totalorder (!%p198_p3), %s490_s15, 1 }
   0x7   : > { %201 = sbr.rel (%p198_p3) target bundleno = 51 (0x33), region = 28 }
   0xc   : > { %s574_s15 = smov (!%p239_p4, %s490_s15), 1 }
   0xd   : > { %s439_s19 = sshll.u32 %s574_s15, 3 }
   0xe   : > { %s245_s22 = scalar_lea.vmem %s564_s0, %s439_s19  ;;  %s252_s25 = scalar_lea.vmem %s565_s1, %s439_s19 }
   0xf   : > { %v272_v0 = vld [vmem:[%s245_s22] sm:$0xff]  ;;  %s264_s28 = scalar_lea.vmem %s568_s4, %s439_s19  ;;  %s260_s5 = scalar_lea.vmem %s567_s3, %s439_s19 }
  0x10   : > { %v444_v1 = vmul.f32 -1.442695, %v272_v0  ;;  %v273_v2 = vld [vmem:[%s252_s25] sm:$0xff]  ;;  %s256_s8 = scalar_lea.vmem %s566_s2, %s439_s19 }
  0x11   : > { %292 = vst [vmem:[%s264_s28] sm:$0xff] %v273_v2 }
  0x12   : > { %472 = vpow2.f32 %v444_v1 }
  0x1f   : > { %v473_v3 = vpop.eup %472 }
  0x20   : > { %v277_v4 = vadd.f32 1.0, %v473_v3 }
  0x22   : > { %474 = vrcp.f32 %v277_v4 }
  0x2f   : > { %v475_v5 = vpop.eup %474 }
  0x30   : > { %v281_v6 = vmul.f32 %v475_v5, %v273_v2  ;;  %288 = vst [vmem:[%s260_s5] sm:$0xff] %v475_v5 }
  0x32   : > { %284 = vst [vmem:[%s256_s8] sm:$0xff] %v281_v6 }
  0x33 PF: > { %s15_s17 = sadd.s32 1, %s498_s17   ;;  %s569_s15 = smov %s494_s16 }
  0x34   : > { %p12_p5 = scmp.ge.s32.totalorder %s15_s17, 4   ;;  %s570_s16 = smov %s572_s18 }
  0x36   :  { %14 = sbr.rel (!%p12_p5) target bundleno = 2 (0x2), region = 89 }

</bundles_post_ra>
